<compile_context>
chip_gen: v6e
topology: v6e:2x2x1
jax: 0.10.0
libtpu: 0.0.40
codegen_flags: <defaults>
</compile_context>

<pallas_src>
import functools

import jax
import jax.numpy as jnp
from jax.experimental import pallas as pl
from jax.experimental.pallas import tpu as pltpu

# ----------------------------- model hyper-params ---------------------------
X_DIM = 1
Y_DIM = 2
K = 5
H_DIMS = [32, 32]
SIG_MAX = 1.0
MU_MIN, MU_MAX = -3.0, 3.0


def _round_up(n, m):
    return ((n + m - 1) // m) * m


# --------------------------------- kernel -----------------------------------
def mdn_kernel(x_ref,
               w1_ref, b1_ref,
               w2_ref, b2_ref,
               wh_ref, bh_ref,
               out_ref,
               *, k, y_dim, sig_max):
    kd = k * y_dim
    head_dim_p = wh_ref.shape[1]          # lane-padded fused head width

    # Lane-only masks: (1, head_dim_p) iota, hoisted above the math, broadcast
    # against the (TB, head_dim_p) head (no full-tile iota vregs).
    lane = jax.lax.broadcasted_iota(jnp.int32, (1, head_dim_p), 1)
    is_pi = lane < k                                          # softmax lanes
    is_sg = jnp.logical_and(lane >= k + kd, lane < k + 2 * kd)  # sigmoid lanes
    # mu lanes [k, k+kd) and zero-padded lanes pass through untouched.

    x = x_ref[...].astype(jnp.float32)

    # ---- hidden layer 1: Linear + Tanh (Dropout == identity in eval mode) ----
    if w1_ref.shape[0] == 1:
        # rank-1 contraction (x_dim == 1): VPU broadcast multiply, skip the MXU.
        h = jnp.tanh(x * w1_ref[...] + b1_ref[...])
    else:
        h = jnp.tanh(
            jnp.dot(x, w1_ref[...].astype(jnp.float32),
                    preferred_element_type=jnp.float32) + b1_ref[...])

    # ---- hidden layer 2: bf16 MXU operands, f32 accumulate, f32 activations ----
    h = jnp.tanh(
        jnp.dot(h.astype(jnp.bfloat16), w2_ref[...],
                preferred_element_type=jnp.float32) + b2_ref[...])

    # ---- fused MoG head: one matmul produces [pi_logit | mu | sigma_raw | pad] ----
    head = (jnp.dot(h.astype(jnp.bfloat16), wh_ref[...],
                    preferred_element_type=jnp.float32)
            + bh_ref[...])                                    # (TB, head_dim_p)

    # softmax over the pi lanes only (masked, full-width VPU/EUP ops)
    pi_logit = jnp.where(is_pi, head, -jnp.inf)
    m = jnp.max(pi_logit, axis=-1, keepdims=True)
    e = jnp.exp(pi_logit - m)              # zero outside pi lanes
    denom = jnp.sum(e, axis=-1, keepdims=True)
    pi_full = e * pl.reciprocal(denom, approx=True)           # EUP vrcp

    # sigma lanes: sig_max * (sigmoid(.) + 1e-8)
    sg_full = jax.nn.sigmoid(head) + 1e-8
    if sig_max != 1.0:                     # static Python check
        sg_full = sig_max * sg_full

    out_ref[...] = jnp.where(is_pi, pi_full, jnp.where(is_sg, sg_full, head))


# --------------------------------- wrapper -----------------------------------
def mdn_forward(x, params, *, k=K, y_dim=Y_DIM, sig_max=SIG_MAX,
                block_b=4096, min_steps=2):
    """x: (B, X_DIM) float32 -> dict(pi=(B,k), mu=(B,k,y_dim), sigma=(B,k,y_dim))."""
    B, x_dim = x.shape
    (w1, b1, w2, b2, wpi, bpi, wmu, bmu, wsg, bsg) = params

    # fuse the three head projections; zero-pad the lane axis to a 32-multiple
    # so the output store path is lane-aligned (sliced back in the wrapper).
    head_dim = k + 2 * k * y_dim
    head_dim_p = _round_up(head_dim, 32)
    w_head = jnp.concatenate([wpi, wmu, wsg], axis=1)          # (H2, head_dim)
    b_head = jnp.concatenate([bpi, bmu, bsg], axis=1)          # (1,  head_dim)
    if head_dim_p != head_dim:
        w_head = jnp.pad(w_head, ((0, 0), (0, head_dim_p - head_dim)))
        b_head = jnp.pad(b_head, ((0, 0), (0, head_dim_p - head_dim)))

    # bf16 MXU operands (accumulation stays f32 inside the kernel)
    w2_bf = w2.astype(jnp.bfloat16)
    w_head_bf = w_head.astype(jnp.bfloat16)

    # batch tiling (multiple of 8 sublanes); pad B up to a multiple of the tile.
    tb = min(block_b, _round_up(B, 8))
    Bp = _round_up(B, tb)
    # v7x megacore: make sure the "parallel" grid axis has >= min_steps steps
    # when the batch is big enough to split.
    if Bp // tb < min_steps and B >= 8 * min_steps:
        tb = _round_up(pl.cdiv(B, min_steps), 8)
        Bp = _round_up(B, tb)
    x_in = jnp.pad(x, ((0, Bp - B), (0, 0))) if Bp != B else x
    grid = (Bp // tb,)

    h1, h2 = w1.shape[1], w2.shape[1]
    cost = pl.CostEstimate(
        flops=2 * Bp * (x_dim * h1 + h1 * h2 + h2 * head_dim_p),
        transcendentals=Bp * (h1 + h2 + head_dim_p + k),
        bytes_accessed=(4 * Bp * (x_dim + head_dim_p)
                        + 4 * (w1.size + b1.size + b2.size + b_head.size)
                        + 2 * (w2_bf.size + w_head_bf.size)),
    )

    def full_spec(shape):
        return pl.BlockSpec(shape, lambda i: (0, 0))

    out = pl.pallas_call(
        functools.partial(mdn_kernel, k=k, y_dim=y_dim, sig_max=sig_max),
        out_shape=jax.ShapeDtypeStruct((Bp, head_dim_p), jnp.float32),
        grid=grid,
        in_specs=[
            pl.BlockSpec((tb, x_dim), lambda i: (i, 0)),       # x tile
            full_spec(w1.shape), full_spec(b1.shape),          # resident weights
            full_spec(w2_bf.shape), full_spec(b2.shape),
            full_spec(w_head_bf.shape), full_spec(b_head.shape),
        ],
        out_specs=pl.BlockSpec((tb, head_dim_p), lambda i: (i, 0)),
        compiler_params=pltpu.CompilerParams(
            dimension_semantics=("parallel",)),
        cost_estimate=cost,
    )(x_in, w1, b1, w2_bf, b2, w_head_bf, b_head)

    out = out[:B, :head_dim]
    kd = k * y_dim
    return {
        "pi": out[:, :k],
        "mu": out[:, k:k + kd].reshape(B, k, y_dim),
        "sigma": out[:, k + kd:].reshape(B, k, y_dim),
    }


# ----------------------------- param construction ----------------------------
def init_params(key):
    """Deterministic init mirroring MixtureDensityNetwork.init_param():
       kaiming-normal weights (std = sqrt(2 / fan_in)), zero biases,
       fc_mu bias ~ Uniform(mu_min, mu_max).  Weights stored (in, out)."""
    def kaiming(key, fan_in, fan_out):
        std = jnp.sqrt(2.0 / fan_in)
        return jax.random.normal(key, (fan_in, fan_out), jnp.float32) * std

    keys = jax.random.split(key, 6)
    w1 = kaiming(keys[0], X_DIM, H_DIMS[0])
    b1 = jnp.zeros((1, H_DIMS[0]), jnp.float32)
    w2 = kaiming(keys[1], H_DIMS[0], H_DIMS[1])
    b2 = jnp.zeros((1, H_DIMS[1]), jnp.float32)
    wpi = kaiming(keys[2], H_DIMS[1], K)
    bpi = jnp.zeros((1, K), jnp.float32)
    wmu = kaiming(keys[3], H_DIMS[1], K * Y_DIM)
    bmu = jax.random.uniform(keys[4], (1, K * Y_DIM), jnp.float32,
                             minval=MU_MIN, maxval=MU_MAX)
    wsg = kaiming(keys[5], H_DIMS[1], K * Y_DIM)
    bsg = jnp.zeros((1, K * Y_DIM), jnp.float32)
    return (w1, b1, w2, b2, wpi, bpi, wmu, bmu, wsg, bsg)


# --------------------------------- reference ---------------------------------
def mdn_forward_ref(x, params, *, k=K, y_dim=Y_DIM, sig_max=SIG_MAX):
    (w1, b1, w2, b2, wpi, bpi, wmu, bmu, wsg, bsg) = params
    h = jnp.tanh(x @ w1 + b1)
    h = jnp.tanh(h @ w2 + b2)
    pi = jax.nn.softmax(h @ wpi + bpi, axis=1)
    mu = (h @ wmu + bmu).reshape(-1, k, y_dim)
    sigma = sig_max * (jax.nn.sigmoid(h @ wsg + bsg) + 1e-8)
    sigma = sigma.reshape(-1, k, y_dim)
    return {"pi": pi, "mu": mu, "sigma": sigma}


# ----------------------------------- main ------------------------------------
if __name__ == "__main__":
    key = jax.random.PRNGKey(0)
    k_x, k_p = jax.random.split(key)
    params = init_params(k_p)

    # Tolerances are loosened vs the pure-f32 version: bf16 MXU operands and
    # the approx softmax reciprocal introduce ~1e-2-level relative error.
    ATOL = 5e-2
    RTOL = 5e-2

    # small shape consistent with the module (x_dim = 1)
    B = 8
    x = jax.random.normal(k_x, (B, X_DIM), jnp.float32)
    out = mdn_forward(x, params)
    jax.block_until_ready(out)
    ref = mdn_forward_ref(x, params)
    for name in ("pi", "mu", "sigma"):
        assert out[name].shape == ref[name].shape, name
        assert jnp.allclose(out[name], ref[name], atol=ATOL, rtol=RTOL), name

    # second check: exercises the batch grid (>1 steps) and padding path
    B2 = 200
    x2 = jax.random.normal(jax.random.PRNGKey(1), (B2, X_DIM), jnp.float32)
    out2 = mdn_forward(x2, params, block_b=64)
    jax.block_until_ready(out2)
    ref2 = mdn_forward_ref(x2, params)
    for name in ("pi", "mu", "sigma"):
        assert out2[name].shape == ref2[name].shape, name
        assert jnp.allclose(out2[name], ref2[name], atol=ATOL, rtol=RTOL), name

    print("KERNEL_OK")
</pallas_src>

<mosaic_0001>
module attributes {stable_mosaic.version = 11 : i64} {
  func.func @mdn_kernel(%arg0: i32, %arg1: memref<8x1xf32, #tpu.memory_space<vmem>>, %arg2: memref<1x32xf32, #tpu.memory_space<vmem>>, %arg3: memref<1x32xf32, #tpu.memory_space<vmem>>, %arg4: memref<32x32xbf16, #tpu.memory_space<vmem>>, %arg5: memref<1x32xf32, #tpu.memory_space<vmem>>, %arg6: memref<32x32xbf16, #tpu.memory_space<vmem>>, %arg7: memref<1x32xf32, #tpu.memory_space<vmem>>, %arg8: memref<8x32xf32, #tpu.memory_space<vmem>>) attributes {dimension_semantics = [#tpu.dimension_semantics<parallel>], iteration_bounds = array<i64: 1>, scalar_prefetch = 0 : i64, scratch_operands = 0 : i64, tpu.core_type = #tpu.core_type<tc>, window_params = [{transform_indices = @transform_0, window_bounds = array<i64: 8, 1>}, {pipeline_mode = #tpu.pipeline_mode<synchronous>, transform_indices = @transform_1, window_bounds = array<i64: 1, 32>}, {pipeline_mode = #tpu.pipeline_mode<synchronous>, transform_indices = @transform_2, window_bounds = array<i64: 1, 32>}, {pipeline_mode = #tpu.pipeline_mode<synchronous>, transform_indices = @transform_3, window_bounds = array<i64: 32, 32>}, {pipeline_mode = #tpu.pipeline_mode<synchronous>, transform_indices = @transform_4, window_bounds = array<i64: 1, 32>}, {pipeline_mode = #tpu.pipeline_mode<synchronous>, transform_indices = @transform_5, window_bounds = array<i64: 32, 32>}, {pipeline_mode = #tpu.pipeline_mode<synchronous>, transform_indices = @transform_6, window_bounds = array<i64: 1, 32>}, {transform_indices = @transform_7, window_bounds = array<i64: 8, 32>}]} {
    %0 = tpu.iota {dimensions = array<i32: 1>} : vector<1x32xi32>
    %c5_i32 = arith.constant 5 : i32
    %1 = vector.broadcast %c5_i32 : i32 to vector<1x32xi32>
    %2 = arith.cmpi slt, %0, %1 : vector<1x32xi32>
    %c15_i32 = arith.constant 15 : i32
    %3 = vector.broadcast %c15_i32 : i32 to vector<1x32xi32>
    %4 = arith.cmpi sge, %0, %3 : vector<1x32xi32>
    %c25_i32 = arith.constant 25 : i32
    %5 = vector.broadcast %c25_i32 : i32 to vector<1x32xi32>
    %6 = arith.cmpi slt, %0, %5 : vector<1x32xi32>
    %7 = arith.andi %4, %6 : vector<1x32xi1>
    %c0 = arith.constant 0 : index
    %c0_0 = arith.constant 0 : index
    %8 = vector.load %arg1[%c0, %c0_0] : memref<8x1xf32, #tpu.memory_space<vmem>>, vector<8x1xf32>
    %c0_1 = arith.constant 0 : index
    %c0_2 = arith.constant 0 : index
    %9 = vector.load %arg2[%c0_1, %c0_2] : memref<1x32xf32, #tpu.memory_space<vmem>>, vector<1x32xf32>
    %10 = vector.broadcast %8 : vector<8x1xf32> to vector<8x32xf32>
    %11 = vector.broadcast %9 : vector<1x32xf32> to vector<8x32xf32>
    %12 = arith.mulf %10, %11 : vector<8x32xf32>
    %c0_3 = arith.constant 0 : index
    %c0_4 = arith.constant 0 : index
    %13 = vector.load %arg3[%c0_3, %c0_4] : memref<1x32xf32, #tpu.memory_space<vmem>>, vector<1x32xf32>
    %14 = vector.broadcast %13 : vector<1x32xf32> to vector<8x32xf32>
    %15 = arith.addf %12, %14 : vector<8x32xf32>
    %16 = math.tanh %15 : vector<8x32xf32>
    %17 = arith.truncf %16 : vector<8x32xf32> to vector<8x32xbf16>
    %c0_5 = arith.constant 0 : index
    %c0_6 = arith.constant 0 : index
    %18 = vector.load %arg4[%c0_5, %c0_6] : memref<32x32xbf16, #tpu.memory_space<vmem>>, vector<32x32xbf16>
    %cst = arith.constant dense<0.000000e+00> : vector<8x32xf32>
    %19 = tpu.matmul %17, %18, %cst {dimension_numbers = #tpu.dot_dimension_numbers<[1], [0], [0], [1], [0, 0, 1, 1], [], []>} : vector<8x32xbf16>, vector<32x32xbf16>, vector<8x32xf32> -> vector<8x32xf32>
    %c0_7 = arith.constant 0 : index
    %c0_8 = arith.constant 0 : index
    %20 = vector.load %arg5[%c0_7, %c0_8] : memref<1x32xf32, #tpu.memory_space<vmem>>, vector<1x32xf32>
    %21 = vector.broadcast %20 : vector<1x32xf32> to vector<8x32xf32>
    %22 = arith.addf %19, %21 : vector<8x32xf32>
    %23 = math.tanh %22 : vector<8x32xf32>
    %24 = arith.truncf %23 : vector<8x32xf32> to vector<8x32xbf16>
    %c0_9 = arith.constant 0 : index
    %c0_10 = arith.constant 0 : index
    %25 = vector.load %arg6[%c0_9, %c0_10] : memref<32x32xbf16, #tpu.memory_space<vmem>>, vector<32x32xbf16>
    %cst_11 = arith.constant dense<0.000000e+00> : vector<8x32xf32>
    %26 = tpu.matmul %24, %25, %cst_11 {dimension_numbers = #tpu.dot_dimension_numbers<[1], [0], [0], [1], [0, 0, 1, 1], [], []>} : vector<8x32xbf16>, vector<32x32xbf16>, vector<8x32xf32> -> vector<8x32xf32>
    %c0_12 = arith.constant 0 : index
    %c0_13 = arith.constant 0 : index
    %27 = vector.load %arg7[%c0_12, %c0_13] : memref<1x32xf32, #tpu.memory_space<vmem>>, vector<1x32xf32>
    %28 = vector.broadcast %27 : vector<1x32xf32> to vector<8x32xf32>
    %29 = arith.addf %26, %28 : vector<8x32xf32>
    %cst_14 = arith.constant 0xFF800000 : f32
    %30 = vector.shape_cast %2 : vector<1x32xi1> to vector<1x32xi1>
    %31 = vector.broadcast %30 : vector<1x32xi1> to vector<8x32xi1>
    %32 = vector.broadcast %cst_14 : f32 to vector<8x32xf32>
    %33 = arith.select %31, %29, %32 : vector<8x32xi1>, vector<8x32xf32>
    %cst_15 = arith.constant dense<0xFF800000> : vector<8xf32>
    %34 = vector.multi_reduction <maximumf>, %33, %cst_15 [1] : vector<8x32xf32> to vector<8xf32>
    %35 = vector.shape_cast %34 : vector<8xf32> to vector<8x1xf32>
    %36 = vector.broadcast %35 : vector<8x1xf32> to vector<8x32xf32>
    %37 = arith.subf %33, %36 : vector<8x32xf32>
    %38 = math.exp %37 : vector<8x32xf32>
    %cst_16 = arith.constant dense<0.000000e+00> : vector<8xf32>
    %39 = vector.multi_reduction <add>, %38, %cst_16 [1] : vector<8x32xf32> to vector<8xf32>
    %40 = vector.shape_cast %39 : vector<8xf32> to vector<8x1xf32>
    %41 = tpu.reciprocal %40 {approx = true} : vector<8x1xf32> -> vector<8x1xf32>
    %42 = vector.broadcast %41 : vector<8x1xf32> to vector<8x32xf32>
    %43 = arith.mulf %38, %42 : vector<8x32xf32>
    %44 = arith.negf %29 : vector<8x32xf32>
    %45 = math.exp %44 : vector<8x32xf32>
    %cst_17 = arith.constant 1.000000e+00 : f32
    %46 = vector.broadcast %cst_17 : f32 to vector<8x32xf32>
    %47 = arith.addf %46, %45 : vector<8x32xf32>
    %48 = arith.divf %46, %47 : vector<8x32xf32>
    %cst_18 = arith.constant 9.99999993E-9 : f32
    %49 = vector.broadcast %cst_18 : f32 to vector<8x32xf32>
    %50 = arith.addf %48, %49 : vector<8x32xf32>
    %51 = vector.shape_cast %7 : vector<1x32xi1> to vector<1x32xi1>
    %52 = vector.broadcast %51 : vector<1x32xi1> to vector<8x32xi1>
    %53 = arith.select %52, %50, %29 : vector<8x32xi1>, vector<8x32xf32>
    %54 = vector.shape_cast %2 : vector<1x32xi1> to vector<1x32xi1>
    %55 = vector.broadcast %54 : vector<1x32xi1> to vector<8x32xi1>
    %56 = arith.select %55, %43, %53 : vector<8x32xi1>, vector<8x32xf32>
    %c0_19 = arith.constant 0 : index
    %c0_20 = arith.constant 0 : index
    %57 = vector.load %arg8[%c0_19, %c0_20] : memref<8x32xf32, #tpu.memory_space<vmem>>, vector<8x32xf32>
    tpu.vector_store %arg8[%c0_19, %c0_20], %56 {strides = array<i32>} : memref<8x32xf32, #tpu.memory_space<vmem>>, vector<8x32xf32>,
    return
  }
  func.func @transform_0(%arg0: i32) -> (i32, i32) {
    %c0_i32 = arith.constant 0 : i32
    %c0_i32_0 = arith.constant 0 : i32
    return %arg0, %c0_i32 : i32, i32
  }
  func.func @transform_1(%arg0: i32) -> (i32, i32) {
    %c0_i32 = arith.constant 0 : i32
    %c0_i32_0 = arith.constant 0 : i32
    %c0_i32_1 = arith.constant 0 : i32
    return %c0_i32, %c0_i32_0 : i32, i32
  }
  func.func @transform_2(%arg0: i32) -> (i32, i32) {
    %c0_i32 = arith.constant 0 : i32
    %c0_i32_0 = arith.constant 0 : i32
    %c0_i32_1 = arith.constant 0 : i32
    return %c0_i32, %c0_i32_0 : i32, i32
  }
  func.func @transform_3(%arg0: i32) -> (i32, i32) {
    %c0_i32 = arith.constant 0 : i32
    %c0_i32_0 = arith.constant 0 : i32
    %c0_i32_1 = arith.constant 0 : i32
    return %c0_i32, %c0_i32_0 : i32, i32
  }
  func.func @transform_4(%arg0: i32) -> (i32, i32) {
    %c0_i32 = arith.constant 0 : i32
    %c0_i32_0 = arith.constant 0 : i32
    %c0_i32_1 = arith.constant 0 : i32
    return %c0_i32, %c0_i32_0 : i32, i32
  }
  func.func @transform_5(%arg0: i32) -> (i32, i32) {
    %c0_i32 = arith.constant 0 : i32
    %c0_i32_0 = arith.constant 0 : i32
    %c0_i32_1 = arith.constant 0 : i32
    return %c0_i32, %c0_i32_0 : i32, i32
  }
  func.func @transform_6(%arg0: i32) -> (i32, i32) {
    %c0_i32 = arith.constant 0 : i32
    %c0_i32_0 = arith.constant 0 : i32
    %c0_i32_1 = arith.constant 0 : i32
    return %c0_i32, %c0_i32_0 : i32, i32
  }
  func.func @transform_7(%arg0: i32) -> (i32, i32) {
    %c0_i32 = arith.constant 0 : i32
    %c0_i32_0 = arith.constant 0 : i32
    return %arg0, %c0_i32 : i32, i32
  }
}

</mosaic_0001>

<bundles_post_ra>
// kernel: tpu_custom_call.1
= control target key start
LH: loop header
LB: loop body
LE: loop exit
PB: predicated region body
PF: predicated region fallthrough
CT: control target
= control target key end

     0   :  { %12 = vsyncpa [#allocation3], 0  ;;  %s467_s0 = inlined_call_operand.vmem [shape: f32[8,1], index: 0, kind: input, shape index: {}]   ;;  %s468_s1 = inlined_call_operand.vmem [shape: f32[1,32], index: 1, kind: input, shape index: {}]   ;;  %s469_s2 = inlined_call_operand.vmem [shape: f32[1,32], index: 2, kind: input, shape index: {}]   ;;  %s470_s3 = inlined_call_operand.hbm [shape: bf16[32,32], index: 3, kind: input, shape index: {}]   ;;  %s471_s4 = inlined_call_operand.hbm [shape: f32[1,32], index: 4, kind: input, shape index: {}]   ;;  %s472_s5 = inlined_call_operand.vmem [shape: bf16[32,32], index: 5, kind: input, shape index: {}]   ;;  %s473_s6 = inlined_call_operand.vmem [shape: f32[1,32], index: 6, kind: input, shape index: {}]   ;;  %s474_s7 = inlined_call_operand.hbm [shape: f32[8,32], index: 7, kind: output, shape index: {}]  }
   0x1   :  { %13 = vsyncpa [#allocation6], 0 }
   0x2   :  { %14 = vsyncpa [#allocation4], 0  ;;  %s385_s24 = smov [#allocation2]  }
   0x3   :  { %s26_s25 = sshll.u32 %s385_s24, 4  ;;  %s27_s25 = int_to_ptr.vmem [resolvable:$true] %s26_s25 }
   0x4   :  { %s327_s26 = scalar_lea.vmem %s27_s25, 256  ;;  %p332_p1 = scmp.lt.s32.totalorder %s27_s25, %s27_s25 }
   0x5   :  { %p328_p0 = scmp.ne.s32.totalorder %s27_s25, %s327_s26  ;;  %p333_p2 = scmp.lt.s32.totalorder %s327_s26, %s327_s26 }
   0x7   :  { %p334_p3 = por %p333_p2, %p332_p1 }
   0x9   :  { %p335_p4 = pnand %p334_p3, %p328_p0 }
   0xb   :  { %338 = shalt.err (!%p335_p4)
}
   0xc   :  { %s386_s27 = smov 64   ;;  %s387_s28 = smov 4  }
   0xd   :  { %32 = dma.hbm_to_vmem [thread:$0]  %s470_s3, 256, %s27_s25, [#allocation3], %s386_s27, %s386_s27, %s387_s28  }
   0xe   :  { %s388_s8 = smov [#allocation5]  }
   0xf   :  { %s39_s9 = sshll.u32 %s388_s8, 4  ;;  %s40_s9 = int_to_ptr.vmem [resolvable:$true] %s39_s9 }
  0x10   :  { %s347_s10 = scalar_lea.vmem %s40_s9, 16  ;;  %s351_s11 = scalar_lea.vmem %s40_s9, 32 }
  0x11   :  { %p348_p5 = scmp.ne.s32.totalorder %s40_s9, %s347_s10  ;;  %p352_p6 = scmp.lt.s32.totalorder %s40_s9, %s40_s9 }
  0x12   :  { %p353_p7 = scmp.lt.s32.totalorder %s351_s11, %s347_s10 }
  0x14   :  { %p354_p8 = por %p353_p7, %p352_p6 }
  0x16   :  { %p355_p9 = pnand %p354_p8, %p348_p5 }
  0x18   :  { %358 = shalt.err (!%p355_p9)
}
  0x19   :  { %42 = dma.hbm_to_vmem [thread:$0]  %s471_s4, 16, %s40_s9, [#allocation6]  }
  0x1a   :  { %379 = dma.done.wait [#allocation3], 256  }
  0x1b   :  { %380 = vsyncadd [#allocation3], 4294967040 }
  0x1c   :  { %381 = dma.done.wait [#allocation6], 16  }
  0x1d   :  { %382 = vsyncadd [#allocation6], 4294967280  ;;  %v389_v0 = vmov 0   ;;  %v60_v1 = vld [vmem:[%s467_s0] sm:$0xff]  ;;  %v303_v2 = vld [vmem:[#allocation2 + $0x8] sm:$0xff]   ;;  %v390_v3 = vmov 0.0   ;;  %v54_v22 = vlaneseq }
  0x1e   :  { %302 = vset.pattern.permute.xlu0 %v389_v0  ;;  %278 = vmatprep.subr.bf16.mxu0 %v390_v3  ;;  %v304_v4 = vld [vmem:[#allocation2] sm:$0xff]   ;;  %vm391_vm0 = vmmov 0   ;;  %vm107_vm1 = vcmask 261120   ;;  %v305_v12 = vld [vmem:[%s472_s5 + $0x8] sm:$0xff]   ;;  %v263_v14 = vld [vmem:[#allocation5] ss:$0 sm:$0xff] }
  0x1f   :  { %64 = vperm.xlu0 %302, %v60_v1   ;;  %286 = vmatprep.subr.bf16.mxu1 %v390_v3  ;;  %v261_v5 = vld [vmem:[%s468_s1] ss:$0 sm:$0xff]  ;;  %v55_v23 = vand.u32 127, %v54_v22 }
  0x20   :  { %279 = vmatpush3.bf16.msra.mxu0 %v303_v2  ;;  %282 = vmatprep.mubr.msk.bf16.mxu0 %vm391_vm0, %v390_v3  ;;  %v262_v6 = vld [vmem:[%s469_s2] ss:$0 sm:$0xff] }
  0x21   :  { %280 = vmatprep.subr.bf16.mxu0 %v390_v3  ;;  %290 = vmatprep.mubr.msk.bf16.mxu1 %vm391_vm0, %v390_v3  ;;  %v306_v13 = vld [vmem:[%s472_s5] sm:$0xff]   ;;  %vm56_vm2 = vcmp.lt.s32.totalorder %v55_v23, 5  ;;  %vm57_vm3 = vcmp.ge.s32.totalorder %v55_v23, 15  ;;  %vm58_vm4 = vcmp.lt.s32.totalorder %v55_v23, 25  ;;  %s392_s5 = smov [#allocation7]  }
  0x22   :  { %287 = vmatpush3.bf16.msra.mxu1 %v305_v12  ;;  %v267_v24 = vld [vmem:[%s473_s6] ss:$0 sm:$0xff]  ;;  %vm59_vm5 = vmand %vm57_vm3, %vm58_vm4  ;;  %s251_s6 = sshll.u32 %s392_s5, 4  ;;  %s252_s6 = int_to_ptr.vmem [resolvable:$true] %s251_s6 }
  0x23   :  { %288 = vmatprep.subr.bf16.mxu1 %v390_v3  ;;  %s359_s21 = scalar_lea.vmem %s252_s6, 128  ;;  %p364_p11 = scmp.lt.s32.totalorder %s252_s6, %s252_s6 }
  0x24   :  { %281 = vmatpush3.bf16.msra.mxu0 %v304_v4  ;;  %p360_p10 = scmp.ne.s32.totalorder %s252_s6, %s359_s21  ;;  %p365_p12 = scmp.lt.s32.totalorder %s359_s21, %s359_s21 }
  0x26   :  { %289 = vmatpush3.bf16.msra.mxu1 %v306_v13  ;;  %p366_p13 = por %p365_p12, %p364_p11 }
  0x28   :  { %p367_p0 = pnand %p366_p13, %p360_p10 }
  0x9a   :  { %v65_v7 = vpop.permute.xlu0 %64 }
  0x9b   :  { %v73_v8 = vmul.f32 %v261_v5, %v65_v7 }
  0x9d   :  { %v81_v9 = vadd.f32 %v262_v6, %v73_v8 }
  0x9f   :  { %307 = vtanh.f32 %v81_v9 }
  0xac   :  { %v308_v10 = vpop.eup %307 }
  0xad   :  { %v83_v11 = vpack.c.bf16 %v308_v10, %v308_v10 }
  0xaf   :  { %283 = vmatmul.mubr.msk.bf16.vlgmr.msra.gmra.mxu0 %vm107_vm1, %v83_v11 }
 0x16f   :  { %v145_v15 = vpop.f32.mrf.mxu0 }
 0x170   :  { %v146_v16 = vadd.f32 %v263_v14, %v145_v15 }
 0x171   :  { %v284_v17 = vpop.f32.mrf.mxu0 }
 0x172   :  { %309 = vtanh.f32 %v146_v16 }
 0x173   :  { %v148_v18 = vpop.f32.mrf.mxu0 }
 0x175   :  { %v285_v19 = vpop.f32.mrf.mxu0 }
 0x17f   :  { %v310_v20 = vpop.eup %309 }
 0x180   :  { %v152_v21 = vpack.c.bf16 %v310_v20, %v310_v20 }
 0x182   :  { %291 = vmatmul.mubr.msk.bf16.vlgmr.msra.gmra.mxu1 %vm107_vm1, %v152_v21 }
 0x242   :  { %v213_v25 = vpop.f32.mrf.mxu1 }
 0x243   :  { %v214_v26 = vadd.f32 %v267_v24, %v213_v25 }
 0x244   :  { %v292_v27 = vpop.f32.mrf.mxu1 }
 0x245   :  { %v221_v28 = vsel %vm56_vm2, %v214_v26, -inf  ;;  %v271_v37 = vmul.f32 -1.442695, %v214_v26 }
 0x246   :  { %v216_v29 = vpop.f32.mrf.mxu1  ;;  %v222_v30 = vsel %vm107_vm1, %v221_v28, -inf }
 0x247   :  { %223 = vmax.xlane.f32.xlu0 %v222_v30 }
 0x248   :  { %v293_v31 = vpop.f32.mrf.mxu1 }
 0x2d0   :  { %v224_v32 = vpop.xlane.xlu0 %223 }
 0x2d1   :  { %v225_v33 = vsub.f32 %v221_v28, %v224_v32 }
 0x2d3   :  { %v226_v34 = vmul.f32 1.442695, %v225_v33 }
 0x2d5   :  { %311 = vpow2.f32 %v226_v34 }
 0x2d6   :  { %313 = vpow2.f32 %v271_v37 }
 0x2e2   :  { %v312_v35 = vpop.eup %311 }
 0x2e3   :  { %v228_v36 = vsel %vm107_vm1, %v312_v35, 0.0  ;;  %v314_v38 = vpop.eup %313 }
 0x2e4   :  { %229 = vadd.xlane.f32.xlu1 %v228_v36  ;;  %v236_v39 = vadd.f32 1.0, %v314_v38 }
 0x2e6   :  { %315 = vrcp.f32 %v236_v39 }
 0x2f3   :  { %v316_v41 = vpop.eup %315 }
 0x2f4   :  { %v239_v42 = vadd.f32 1e-08, %v316_v41 }
 0x2f6   :  { %v242_v45 = vsel %vm59_vm5, %v239_v42, %v214_v26 }
 0x36d   :  { %v230_v40 = vpop.xlane.xlu1 %229 }
 0x36e   :  { %317 = vrcp.f32 %v230_v40 }
 0x37b   :  { %v318_v43 = vpop.eup %317 }
 0x37c   :  { %v232_v44 = vmul.f32 %v318_v43, %v312_v35 }
 0x37e   :  { %v243_v46 = vsel %vm56_vm2, %v232_v44, %v242_v45 }
 0x37f   :  { %244 = vst.msk [vmem:[#allocation7] sm:$0xff] %vm107_vm1, %v243_v46 }
 0x380   :  { %370 = shalt.err (!%p367_p0)
}
 0x381   :  { %254 = dma.vmem_to_hbm [thread:$0]  %s252_s6, 128, %s474_s7, [#allocation4]  }
 0x382   :  { %383 = dma.done.wait [#allocation4], 128  }
 0x383   :  { %384 = vsyncadd [#allocation4], 4294967168 }
 0x384   :  { %258 = vsyncpa [#allocation3], 1 }
 0x385   :  { %259 = vsyncpa [#allocation6], 1 }
 0x386   :  { %260 = vsyncpa [#allocation4], 1 }

</bundles_post_ra>
